<compile_context>
chip_gen: v7x
topology: tpu7x:2x2x1
jax: 0.10.0
libtpu: 0.0.40
codegen_flags: <defaults>
</compile_context>

<pallas_src>
import jax
import jax.numpy as jnp
from jax.experimental import pallas as pl
from jax.experimental.pallas import tpu as pltpu


def _round_up(v, m):
    return ((v + m - 1) // m) * m


def _vmem_capacity_bytes():
    try:
        return int(pltpu.get_tpu_info().vmem_capacity_bytes)
    except Exception:
        return 64 * 1024 * 1024  # conservative fallback (v7x per-TC VMEM)


def _choose_tiling(B, L, x_itemsize, t_itemsize):
    """Pick (batch-tile, vmem_limit_bytes) from the actual chip's VMEM capacity.

    Keeps the double-buffered input working set at ~2/3 of the scoped VMEM
    limit, and caps the tile so the grid has at least 2 steps when B > 8
    (v7x dual-TensorCore sharding + pipeline overlap)."""
    cap = _vmem_capacity_bytes()
    vmem_limit = max(32 * 1024 * 1024, min((cap * 3) // 4, 112 * 1024 * 1024))
    if B <= 8:
        return B, vmem_limit
    bytes_per_row = max(1, L * (x_itemsize + t_itemsize))
    # 2 inputs x 2 pipeline buffers live at once -> budget ~ limit/3 per tile copy.
    tb = (vmem_limit // 3) // bytes_per_row
    tb = max(8, (tb // 8) * 8)
    # >= 2 grid steps: feeds both v7x TCs; harmless on single-TC v5e/v6e.
    tb = min(tb, max(8, _round_up(pl.cdiv(B, 2), 8)))
    return tb, vmem_limit


def _make_kernel(B, TB, mask_tail):
    def kernel(x_ref, t_ref, out_ref):
        x = x_ref[...].astype(jnp.float32)  # (TB, L) cast in-kernel (free VPU op)
        t = t_ref[...]                      # native dtype indicator

        pos = t > 0
        neg = t == 0

        if mask_tail:
            # Only generated for the ragged case (B % TB != 0): mask tail rows
            # of the last tile with a cheap (TB,1) column iota.
            pid = pl.program_id(0)
            row = jax.lax.broadcasted_iota(jnp.int32, (TB, 1), 0)
            valid = (pid * TB + row) < B
            pos = jnp.logical_and(pos, valid)
            neg = jnp.logical_and(neg, valid)

        neg_inf = jnp.float32(-jnp.inf)
        pos_inf = jnp.float32(jnp.inf)

        # Two per-row shifts keep every in-row exp argument <= 0.
        m_neg = jnp.max(jnp.where(neg, x, neg_inf), axis=1, keepdims=True)  # (TB,1)
        m_pos = jnp.min(jnp.where(pos, x, pos_inf), axis=1, keepdims=True)  # (TB,1)

        row_ok = jnp.logical_and(m_neg > neg_inf, m_pos < pos_inf)          # (TB,1)
        m_neg_s = jnp.where(row_ok, m_neg, 0.0)
        m_pos_s = jnp.where(row_ok, m_pos, 0.0)

        # Single signed exp per element (one EUP op / element):
        #   positives -> exp(m_pos - x) <= 1,  negatives -> exp(x - m_neg) <= 1.
        arg = jnp.where(pos, m_pos_s - x, x - m_neg_s)
        e = jnp.exp(arg)

        s_neg = jnp.sum(jnp.where(neg, e, 0.0), axis=1, keepdims=True)      # (TB,1)
        s_pos = jnp.sum(jnp.where(pos, e, 0.0), axis=1, keepdims=True)      # (TB,1)

        # Per-row pairwise sum; rows with no positive or no negative contribute 0.
        row_sum = jnp.where(
            row_ok, s_neg * s_pos * jnp.exp(m_neg_s - m_pos_s), 0.0)
        partial = jnp.sum(row_sum)

        # Lane-dense (1,8,128) partial-sum tile; combined + log1p'ed outside.
        out_ref[...] = jnp.full(out_ref.shape, partial, dtype=jnp.float32)

    return kernel


def lsep_loss(inp, target):
    """Pallas implementation of LSEPLoss.forward. Returns float32 array of shape (1,).

    `target` may be any dtype (float/int8/bool): positives are target > 0,
    negatives are target == 0, matching the PyTorch module. Passing target as
    int8/bool and input as bf16 reduces HBM traffic (the kernel is mem-bound)."""
    B, L = inp.shape
    assert target.shape == (B, L)

    tb, vmem_limit = _choose_tiling(B, L, inp.dtype.itemsize, target.dtype.itemsize)
    num_tiles = pl.cdiv(B, tb)
    mask_tail = (B % tb) != 0

    partials = pl.pallas_call(
        _make_kernel(B, tb, mask_tail),
        out_shape=jax.ShapeDtypeStruct((num_tiles, 8, 128), jnp.float32),
        grid_spec=pltpu.PrefetchScalarGridSpec(
            num_scalar_prefetch=0,
            grid=(num_tiles,),
            in_specs=[
                pl.BlockSpec((tb, L), lambda i: (i, 0)),
                pl.BlockSpec((tb, L), lambda i: (i, 0)),
            ],
            out_specs=pl.BlockSpec((1, 8, 128), lambda i: (i, 0, 0)),
        ),
        compiler_params=pltpu.CompilerParams(
            dimension_semantics=("parallel",),
            vmem_limit_bytes=vmem_limit,
        ),
    )(inp, target)  # native dtypes; no wrapper casts (saves HBM traffic)

    total = jnp.sum(partials[:, 0, 0])
    return jnp.log1p(total).reshape((1,)).astype(jnp.float32)


def lsep_loss_ref(inp, target):
    """Pure-JAX reference mirroring the PyTorch triple loop."""
    x = inp.astype(jnp.float32)
    t = target.astype(jnp.float32)
    pos = t > 0.0
    neg = t == 0.0
    # pairwise exp(x_n - x_p) over pos(p) x neg(n); select-before-sum avoids
    # inf*0 on unselected pairs.
    diff = x[:, None, :] - x[:, :, None]          # [b, p, n] = x_n - x_p
    mask = jnp.logical_and(pos[:, :, None], neg[:, None, :])
    s = jnp.sum(jnp.where(mask, jnp.exp(diff), 0.0))
    return jnp.log1p(s).reshape((1,))


if __name__ == "__main__":
    key = jax.random.PRNGKey(0)
    k1, k2, k3, k4 = jax.random.split(key, 4)

    # --- small case matching the module's (N, C) multi-label layout ---
    B, L = 2, 8
    inp = jax.random.normal(k1, (B, L), dtype=jnp.float32)
    target = (jax.random.uniform(k2, (B, L)) > 0.5).astype(jnp.float32)
    target = target.at[:, 0].set(1.0).at[:, 1].set(0.0)  # >=1 pos & neg per row

    loss = jax.block_until_ready(lsep_loss(inp, target))
    loss_ref = jax.block_until_ready(lsep_loss_ref(inp, target))
    assert loss.shape == (1,) and loss.dtype == jnp.float32
    assert jnp.allclose(loss, loss_ref, rtol=1e-5, atol=1e-5), (loss, loss_ref)

    # --- larger case: batch tiling + tail masking + int8 target (narrow HBM) ---
    B2, L2 = 20, 8
    inp2 = jax.random.normal(k3, (B2, L2), dtype=jnp.float32)
    target2 = (jax.random.uniform(k4, (B2, L2)) > 0.5).astype(jnp.int8)
    target2 = target2.at[:, 0].set(1).at[:, 1].set(0)
    # rows with no positives / no negatives must contribute zero:
    target2 = target2.at[3, :].set(0).at[7, :].set(1)

    loss2 = jax.block_until_ready(lsep_loss(inp2, target2))
    loss2_ref = jax.block_until_ready(lsep_loss_ref(inp2, target2))
    assert jnp.allclose(loss2, loss2_ref, rtol=1e-5, atol=1e-5), (loss2, loss2_ref)

    # --- wide-dynamic-range case: single-shift scheme would overflow here ---
    inp3 = jnp.array([[50.0, -50.0, 0.0, 0.1, -0.2, 0.3, 1.0, -1.0],
                      [10.0, -40.0, 0.5, 0.0, -0.5, 2.0, -2.0, 3.0]],
                     dtype=jnp.float32)
    target3 = jnp.array([[1, 1, 0, 0, 0, 0, 0, 0],
                         [1, 1, 0, 0, 0, 0, 1, 0]], dtype=jnp.float32)
    loss3 = jax.block_until_ready(lsep_loss(inp3, target3))
    loss3_ref = jax.block_until_ready(lsep_loss_ref(inp3, target3))
    assert bool(jnp.isfinite(loss3).all()), loss3
    assert jnp.allclose(loss3, loss3_ref, rtol=1e-5, atol=1e-5), (loss3, loss3_ref)

    print("KERNEL_OK")
</pallas_src>

<mosaic_0001>
module attributes {stable_mosaic.version = 11 : i64} {
  func.func @kernel(%arg0: i32, %arg1: memref<2x8xf32, #tpu.memory_space<vmem>>, %arg2: memref<2x8xf32, #tpu.memory_space<vmem>>, %arg3: memref<1x8x128xf32, #tpu.memory_space<vmem>>) attributes {dimension_semantics = [#tpu.dimension_semantics<parallel>], iteration_bounds = array<i64: 1>, scalar_prefetch = 0 : i64, scratch_operands = 0 : i64, tpu.core_type = #tpu.core_type<tc>, window_params = [{transform_indices = @transform_0, window_bounds = array<i64: 2, 8>}, {transform_indices = @transform_1, window_bounds = array<i64: 2, 8>}, {transform_indices = @transform_2, window_bounds = array<i64: 1, 8, 128>}]} {
    %c0 = arith.constant 0 : index
    %c0_0 = arith.constant 0 : index
    %0 = vector.load %arg1[%c0, %c0_0] : memref<2x8xf32, #tpu.memory_space<vmem>>, vector<2x8xf32>
    %c0_1 = arith.constant 0 : index
    %c0_2 = arith.constant 0 : index
    %1 = vector.load %arg2[%c0_1, %c0_2] : memref<2x8xf32, #tpu.memory_space<vmem>>, vector<2x8xf32>
    %cst = arith.constant 0.000000e+00 : f32
    %2 = vector.broadcast %cst : f32 to vector<2x8xf32>
    %3 = arith.cmpf ogt, %1, %2 : vector<2x8xf32>
    %cst_3 = arith.constant 0.000000e+00 : f32
    %4 = vector.broadcast %cst_3 : f32 to vector<2x8xf32>
    %5 = arith.cmpf oeq, %1, %4 : vector<2x8xf32>
    %cst_4 = arith.constant 0xFF800000 : f32
    %6 = vector.broadcast %cst_4 : f32 to vector<2x8xf32>
    %7 = arith.select %5, %0, %6 : vector<2x8xi1>, vector<2x8xf32>
    %cst_5 = arith.constant dense<0xFF800000> : vector<2xf32>
    %8 = vector.multi_reduction <maximumf>, %7, %cst_5 [1] : vector<2x8xf32> to vector<2xf32>
    %9 = vector.shape_cast %8 : vector<2xf32> to vector<2x1xf32>
    %cst_6 = arith.constant 0x7F800000 : f32
    %10 = vector.broadcast %cst_6 : f32 to vector<2x8xf32>
    %11 = arith.select %3, %0, %10 : vector<2x8xi1>, vector<2x8xf32>
    %cst_7 = arith.constant dense<0x7F800000> : vector<2xf32>
    %12 = vector.multi_reduction <minimumf>, %11, %cst_7 [1] : vector<2x8xf32> to vector<2xf32>
    %13 = vector.shape_cast %12 : vector<2xf32> to vector<2x1xf32>
    %cst_8 = arith.constant 0xFF800000 : f32
    %14 = vector.broadcast %cst_8 : f32 to vector<2x1xf32>
    %15 = arith.cmpf ogt, %9, %14 : vector<2x1xf32>
    %cst_9 = arith.constant 0x7F800000 : f32
    %16 = vector.broadcast %cst_9 : f32 to vector<2x1xf32>
    %17 = arith.cmpf olt, %13, %16 : vector<2x1xf32>
    %18 = arith.andi %15, %17 : vector<2x1xi1>
    %cst_10 = arith.constant 0.000000e+00 : f32
    %19 = vector.broadcast %cst_10 : f32 to vector<2x1xf32>
    %20 = arith.select %18, %9, %19 : vector<2x1xi1>, vector<2x1xf32>
    %cst_11 = arith.constant 0.000000e+00 : f32
    %21 = vector.broadcast %cst_11 : f32 to vector<2x1xf32>
    %22 = arith.select %18, %13, %21 : vector<2x1xi1>, vector<2x1xf32>
    %23 = vector.broadcast %22 : vector<2x1xf32> to vector<2x8xf32>
    %24 = arith.subf %23, %0 : vector<2x8xf32>
    %25 = vector.broadcast %20 : vector<2x1xf32> to vector<2x8xf32>
    %26 = arith.subf %0, %25 : vector<2x8xf32>
    %27 = arith.select %3, %24, %26 : vector<2x8xi1>, vector<2x8xf32>
    %28 = math.exp %27 : vector<2x8xf32>
    %cst_12 = arith.constant 0.000000e+00 : f32
    %29 = vector.broadcast %cst_12 : f32 to vector<2x8xf32>
    %30 = arith.select %5, %28, %29 : vector<2x8xi1>, vector<2x8xf32>
    %cst_13 = arith.constant dense<0.000000e+00> : vector<2xf32>
    %31 = vector.multi_reduction <add>, %30, %cst_13 [1] : vector<2x8xf32> to vector<2xf32>
    %32 = vector.shape_cast %31 : vector<2xf32> to vector<2x1xf32>
    %cst_14 = arith.constant 0.000000e+00 : f32
    %33 = vector.broadcast %cst_14 : f32 to vector<2x8xf32>
    %34 = arith.select %3, %28, %33 : vector<2x8xi1>, vector<2x8xf32>
    %cst_15 = arith.constant dense<0.000000e+00> : vector<2xf32>
    %35 = vector.multi_reduction <add>, %34, %cst_15 [1] : vector<2x8xf32> to vector<2xf32>
    %36 = vector.shape_cast %35 : vector<2xf32> to vector<2x1xf32>
    %37 = arith.mulf %32, %36 : vector<2x1xf32>
    %38 = arith.subf %20, %22 : vector<2x1xf32>
    %39 = math.exp %38 : vector<2x1xf32>
    %40 = arith.mulf %37, %39 : vector<2x1xf32>
    %cst_16 = arith.constant 0.000000e+00 : f32
    %41 = vector.broadcast %cst_16 : f32 to vector<2x1xf32>
    %42 = arith.select %18, %40, %41 : vector<2x1xi1>, vector<2x1xf32>
    %43 = vector.shape_cast %42 : vector<2x1xf32> to vector<1x2x1xf32>
    %cst_17 = arith.constant dense<0.000000e+00> : vector<1xf32>
    %44 = vector.multi_reduction <add>, %43, %cst_17 [1, 2] : vector<1x2x1xf32> to vector<1xf32>
    %45 = vector.shape_cast %44 : vector<1xf32> to vector<1x1x1xf32>
    %46 = vector.extract %45[0, 0, 0] : f32 from vector<1x1x1xf32>
    %47 = vector.broadcast %46 : f32 to vector<1x8x128xf32>
    %c0_18 = arith.constant 0 : index
    %c0_19 = arith.constant 0 : index
    %c0_20 = arith.constant 0 : index
    %48 = vector.load %arg3[%c0_18, %c0_19, %c0_20] : memref<1x8x128xf32, #tpu.memory_space<vmem>>, vector<1x8x128xf32>
    tpu.vector_store %arg3[%c0_18, %c0_19, %c0_20], %47 {strides = array<i32>} : memref<1x8x128xf32, #tpu.memory_space<vmem>>, vector<1x8x128xf32>,
    return
  }
  func.func @transform_0(%arg0: i32) -> (i32, i32) {
    %c0_i32 = arith.constant 0 : i32
    %c0_i32_0 = arith.constant 0 : i32
    return %arg0, %c0_i32 : i32, i32
  }
  func.func @transform_1(%arg0: i32) -> (i32, i32) {
    %c0_i32 = arith.constant 0 : i32
    %c0_i32_0 = arith.constant 0 : i32
    return %arg0, %c0_i32 : i32, i32
  }
  func.func @transform_2(%arg0: i32) -> (i32, i32, i32) {
    %c0_i32 = arith.constant 0 : i32
    %c0_i32_0 = arith.constant 0 : i32
    %c0_i32_1 = arith.constant 0 : i32
    return %arg0, %c0_i32, %c0_i32_0 : i32, i32, i32
  }
}

</mosaic_0001>

<bundles_post_ra>
// kernel: tpu_custom_call.1
= control target key start
LH: loop header
LB: loop body
LE: loop exit
PB: predicated region body
PF: predicated region fallthrough
CT: control target
= control target key end

     0   :  { %7 = vsyncpa [#allocation3], 0  ;;  %s208_s0 = inlined_call_operand.hbm [shape: f32[2,8], index: 0, kind: input, shape index: {}]   ;;  %s209_s1 = inlined_call_operand.vmem [shape: f32[2,8], index: 1, kind: input, shape index: {}]   ;;  %s210_s2 = inlined_call_operand.hbm [shape: f32[1,8,128], index: 2, kind: output, shape index: {}]  }
   0x1   :  { %8 = vsyncpa [#allocation4], 0  ;;  %s145_s9 = smov [#allocation2]   ;;  %s97_s13 = scalar_lea.hbm %s208_s0, 32 }
   0x2   :  { %s15_s10 = sshll.u32 %s145_s9, 4  ;;  %p98_p0 = scmp.ne.s32.totalorder %s208_s0, %s97_s13  ;;  %s16_s10 = int_to_ptr.vmem [resolvable:$true] %s15_s10 }
   0x3   :  { %p101_p1 = scmp.lt.u32.totalorder %s97_s13, %s208_s0 }
   0x5   :  { %p103_p2 = pnand %p101_p1, %p98_p0 }
   0x7   :  { %106 = shalt.err (!%p103_p2)
}
   0x8   :  { %s107_s18 = scalar_lea.vmem %s16_s10, 32  ;;  %p112_p4 = scmp.lt.s32.totalorder %s16_s10, %s16_s10 }
   0x9   :  { %p108_p3 = scmp.ne.s32.totalorder %s16_s10, %s107_s18  ;;  %p113_p5 = scmp.lt.s32.totalorder %s107_s18, %s107_s18 }
   0xb   :  { %p114_p6 = por %p113_p5, %p112_p4 }
   0xd   :  { %p115_p7 = pnand %p114_p6, %p108_p3 }
   0xf   :  { %118 = shalt.err (!%p115_p7)
}
  0x10   :  { %18 = dma.hbm_to_vmem [thread:$0]  %s208_s0, 32, %s16_s10, [#allocation3]  }
  0x11   :  { %141 = dma.done.wait [#allocation3], 32  }
  0x12   :  { %142 = vsyncadd [#allocation3], 4294967264  ;;  %v24_v0 = vld [vmem:[#allocation2] sm:$0x3]  ;;  %vm29_vm0 = vcmask 58368   ;;  %vm61_vm6 = vcmask 1024  }
  0x13   :  { %v25_v1 = vld [vmem:[%s209_s1] sm:$0x3]  ;;  %s146_s0 = smov [#allocation5]  }
  0x14   :  { %vm27_vm1 = vcmp.eq.f32.partialorder %v25_v1, 0.0  ;;  %vm26_vm2 = vcmp.gt.f32.partialorder %v25_v1, 0.0  ;;  %s80_s1 = sshll.u32 %s146_s0, 4  ;;  %s81_s1 = int_to_ptr.vmem [resolvable:$true] %s80_s1 }
  0x15   :  { %v28_v2 = vsel %vm27_vm1, %v24_v0, -inf  ;;  %v33_v3 = vsel %vm26_vm2, %v24_v0, inf  ;;  %s119_s24 = scalar_lea.vmem %s81_s1, 128  ;;  %p124_p9 = scmp.lt.s32.totalorder %s81_s1, %s81_s1 }
  0x16   :  { %v30_v4 = vsel %vm29_vm0, %v28_v2, -inf  ;;  %v34_v5 = vsel %vm29_vm0, %v33_v3, inf  ;;  %p120_p8 = scmp.ne.s32.totalorder %s81_s1, %s119_s24  ;;  %p125_p10 = scmp.lt.s32.totalorder %s119_s24, %s119_s24 }
  0x17   :  { %31 = vmax.xlane.f32.xlu0 %v30_v4 }
  0x18   :  { %p126_p11 = por %p125_p10, %p124_p9 }
  0x1a   :  { %p127_p12 = pnand %p126_p11, %p120_p8 }
  0x1b   :  { %35 = vmin.xlane.f32.xlu0 %v34_v5 }
  0xa4   :  { %v32_v6 = vpop.xlane.xlu0 %31 }
  0xa5   :  { %vm37_vm3 = vcmp.gt.f32.partialorder %v32_v6, -inf }
  0xa8   :  { %v36_v7 = vpop.xlane.xlu0 %35 }
  0xa9   :  { %vm38_vm4 = vcmp.lt.f32.partialorder %v36_v7, inf }
  0xaa   :  { %vm181_vm5 = vmand %vm37_vm3, %vm38_vm4 }
  0xab   :  { %v40_v9 = vsel %vm181_vm5, %v32_v6, 0.0  ;;  %v41_v10 = vsel %vm181_vm5, %v36_v7, 0.0 }
  0xac   :  { %v42_v11 = vsub.f32 %v41_v10, %v24_v0  ;;  %v43_v12 = vsub.f32 %v24_v0, %v40_v9  ;;  %v56_v13 = vsub.f32 %v40_v9, %v41_v10 }
  0xae   :  { %v44_v14 = vsel %vm26_vm2, %v42_v11, %v43_v12  ;;  %v57_v21 = vmul.f32 1.442695, %v56_v13 }
  0xaf   :  { %v45_v15 = vmul.f32 1.442695, %v44_v14 }
  0xb1   :  { %93 = vpow2.f32 %v45_v15 }
  0xb2   :  { %95 = vpow2.f32 %v57_v21 }
  0xbb   :  { %v94_v16 = vpop.eup %93 }
  0xbc   :  { %v47_v17 = vsel %vm27_vm1, %v94_v16, 0.0  ;;  %v51_v19 = vsel %vm26_vm2, %v94_v16, 0.0  ;;  %v96_v25 = vpop.eup %95 }
  0xbd   :  { %v48_v18 = vsel %vm29_vm0, %v47_v17, 0.0  ;;  %v52_v20 = vsel %vm29_vm0, %v51_v19, 0.0 }
  0xbe   :  { %49 = vadd.xlane.f32.xlu1 %v48_v18 }
  0xc2   :  { %53 = vadd.xlane.f32.xlu1 %v52_v20 }
 0x14b   :  { %v50_v22 = vpop.xlane.xlu1 %49 }
 0x14f   :  { %v54_v23 = vpop.xlane.xlu1 %53 }
 0x150   :  { %v55_v24 = vmul.f32 %v54_v23, %v50_v22 }
 0x152   :  { %v59_v26 = vmul.f32 %v96_v25, %v55_v24 }
 0x154   :  { %v60_v27 = vsel %vm181_vm5, %v59_v26, 0.0 }
 0x155   :  { %v62_v28 = vsel %vm61_vm6, %v60_v27, 0.0 }
 0x156   :  { %63 = vadd.xlane.f32.xlu0 %v62_v28 }
 0x1e3   :  { %v64_v29 = vpop.xlane.xlu0 %63 }
 0x1e4   :  { %v65_v30 = vrot.slane %v64_v29, 4 }
 0x1e6   :  { %v66_v31 = vadd.f32 %v65_v30, %v64_v29 }
 0x1e8   :  { %v67_v32 = vrot.slane %v66_v31, 2 }
 0x1ea   :  { %v68_v33 = vadd.f32 %v67_v32, %v66_v31 }
 0x1ec   :  { %v69_v34 = vrot.slane %v68_v33, 1 }
 0x1ee   :  { %v70_v35 = vadd.f32 %v69_v34, %v68_v33 }
 0x1f0   :  { %89 = vpush %v70_v35 }
 0x221   :  { %s90_s23 = spop %89 }
 0x222   :  { %v72_v36 = vstv %s90_s23 }
 0x223   :  { %73 = vst [vmem:[#allocation5] sm:$0xff] %v72_v36 }
 0x224   :  { %130 = shalt.err (!%p127_p12)
}
 0x225   :  { %s131_s27 = scalar_lea.hbm %s210_s2, 128 }
 0x226   :  { %p132_p13 = scmp.ne.s32.totalorder %s210_s2, %s131_s27  ;;  %p135_p0 = scmp.lt.u32.totalorder %s131_s27, %s210_s2 }
 0x228   :  { %p137_p1 = pnand %p135_p0, %p132_p13 }
 0x22a   :  { %140 = shalt.err (!%p137_p1)
}
 0x22b   :  { %83 = dma.vmem_to_hbm [thread:$0]  %s81_s1, 128, %s210_s2, [#allocation4]  }
 0x22c   :  { %143 = dma.done.wait [#allocation4], 128  }
 0x22d   :  { %144 = vsyncadd [#allocation4], 4294967168 }
 0x22e   :  { %87 = vsyncpa [#allocation3], 1 }
 0x22f   :  { %88 = vsyncpa [#allocation4], 1 }

</bundles_post_ra>
